<compile_context>
chip_gen: v6e
topology: v6e:2x2x1
jax: 0.10.0
libtpu: 0.0.40
codegen_flags: <defaults>
</compile_context>

<pallas_src>
import jax
import jax.numpy as jnp
from jax import lax
from jax.experimental import pallas as pl
from jax.experimental.pallas import tpu as pltpu


def _multitoken_avg_kernel(x_ref, seq_ref, w_ref, b_ref, o_ref):
    # x_ref  : (TB, T, D_in)   token features (f32 or bf16)
    # seq_ref: (TB, 1)  int32  sequence lengths
    # w_ref  : (D_in, D_emb)   embed_net Linear weight
    # b_ref  : (1, D_emb)      embed_net Linear bias
    # o_ref  : (TB, D_emb) f32 averaged embeddings
    tb, t, _ = x_ref.shape
    inv_t = jnp.float32(1.0 / t)

    # --- masked uniform attention scores (all tiny (TB, T)/(TB, 1) tensors) ---
    idx = lax.broadcasted_iota(jnp.int32, (tb, t), 1)                 # (TB, T)
    mask = (idx < seq_ref[...]).astype(jnp.float32)                   # (TB, T)
    masked = mask * inv_t                                             # (TB, T)
    att = jnp.maximum(jnp.sum(masked, axis=1, keepdims=True), 1e-5)   # (TB, 1)

    # EUP approximate reciprocal + one Newton step: keeps f32 accuracy while
    # the divide stays off the VPU slots.
    inv = pl.reciprocal(att, approx=True)
    inv = inv * (2.0 - att * inv)

    scores = masked * inv                                             # (TB, T)
    ssum = jnp.sum(scores, axis=1, keepdims=True)                     # (TB, 1)

    # --- token reduction BEFORE the matmul (emb is affine in x) ---
    xbar = jnp.sum(x_ref[...].astype(jnp.float32) * scores[:, :, None],
                   axis=1)                                            # (TB, D_in)

    out = jnp.dot(xbar, w_ref[...].astype(jnp.float32),
                  preferred_element_type=jnp.float32)                 # (TB, D_emb)
    out = out + ssum * b_ref[...].astype(jnp.float32)
    o_ref[...] = out.astype(o_ref.dtype)


def multitoken_avg_embed(x, sequence_lengths, w, b, *, batch_tile=None,
                         vmem_limit_bytes=None, interpret=False):
    """Fused MultitokenAvgEmbed forward.

    x: (B, T, D_in) f32/bf16; sequence_lengths: (B,) int; w: (D_in, D_emb);
    b: (D_emb,).  Returns (B, D_emb) f32.
    """
    B, T, D_in = x.shape
    D_in_w, D_emb = w.shape
    assert D_in_w == D_in, "weight shape must be (D_in, D_emb)"
    itemsize = jnp.dtype(x.dtype).itemsize

    if batch_tile is None:
        # HBM-bound stream over x: pick the largest tile whose *double-buffered*
        # x slab stays within a budget that fits every generation (v7x: 64 MiB
        # physical VMEM; v5e/v6e: 128 MiB), while keeping the grid length >= 2
        # so the "parallel" axis can still split across v7x's two TensorCores.
        x_slab_budget = 24 << 20                       # bytes for 2 x buffers
        rows = x_slab_budget // max(1, 2 * T * D_in * itemsize)
        rows = min(rows, 512)                          # ~roofline saturation
        rows = min(rows, max(8, B // 2))               # keep >= 2 grid steps
        batch_tile = max(8, (int(rows) // 8) * 8)      # sublane multiple

    # Pad the batch to a multiple of batch_tile; padded rows get length 0 and
    # produce exact zeros (same as the reference's 1e-5 clamp path).
    B_pad = pl.cdiv(B, batch_tile) * batch_tile
    seq2 = sequence_lengths.astype(jnp.int32).reshape(B, 1)
    if B_pad != B:
        x = jnp.pad(x, ((0, B_pad - B), (0, 0), (0, 0)))
        seq2 = jnp.pad(seq2, ((0, B_pad - B), (0, 0)))
    b2 = b.reshape(1, D_emb)

    if vmem_limit_bytes is None:
        need = (2 * batch_tile * T * D_in * itemsize                 # x (dbl-buf)
                + 2 * batch_tile * 4                                  # lengths
                + 2 * D_in * D_emb * jnp.dtype(w.dtype).itemsize      # weight
                + 2 * D_emb * 4                                       # bias
                + 2 * batch_tile * D_emb * 4)                         # output
        # 2x headroom for compiler scratch; clamp under the v7x 64 MiB budget.
        vmem_limit_bytes = int(min(max(2 * need, 32 << 20), 48 << 20))

    grid = (B_pad // batch_tile,)
    out = pl.pallas_call(
        _multitoken_avg_kernel,
        out_shape=jax.ShapeDtypeStruct((B_pad, D_emb), jnp.float32),
        grid_spec=pltpu.PrefetchScalarGridSpec(
            num_scalar_prefetch=0,
            grid=grid,
            in_specs=[
                # x is the only large streamed operand.  If profiling shows the
                # DMA still exposed, sweep pipeline_mode=pl.Buffered(3) here
                # (costs one extra x tile of VMEM -> re-check the v7x budget).
                pl.BlockSpec((batch_tile, T, D_in), lambda i: (i, 0, 0)),
                pl.BlockSpec((batch_tile, 1), lambda i: (i, 0)),
                pl.BlockSpec((D_in, D_emb), lambda i: (0, 0)),
                pl.BlockSpec((1, D_emb), lambda i: (0, 0)),
            ],
            out_specs=pl.BlockSpec((batch_tile, D_emb), lambda i: (i, 0)),
        ),
        compiler_params=pltpu.CompilerParams(
            dimension_semantics=("parallel",),
            vmem_limit_bytes=vmem_limit_bytes),
        interpret=interpret,
    )(x, seq2, w, b2)
    return out[:B] if B_pad != B else out


def _reference(x, sequence_lengths, w, b):
    """Pure-JAX reference mirroring the PyTorch forward exactly."""
    B, T, D_in = x.shape
    emb = jnp.einsum("btd,de->bte", x, w) + b          # embed_net per token, stacked
    scores = jnp.full((T,), 1.0 / T, dtype=jnp.float32)
    idxes = jnp.arange(T)[None, :]
    mask = (idxes < sequence_lengths[:, None]).astype(jnp.float32)
    masked_scores = scores * mask
    att_sums = jnp.maximum(masked_scores.sum(axis=1, keepdims=True), 1e-5)
    scores = masked_scores / att_sums
    weighted = emb * scores[:, :, None]
    return weighted.sum(axis=1)


if __name__ == "__main__":
    # Small, deterministic example consistent with the module's forward:
    # x: (batch=16, seq=8, token_dim=32), embed dim = 64.
    B, T, D_in, D_emb = 16, 8, 32, 64

    key = jax.random.PRNGKey(0)
    kx, kl, kw, kb = jax.random.split(key, 4)

    x = jax.random.normal(kx, (B, T, D_in), dtype=jnp.float32)
    sequence_lengths = jax.random.randint(kl, (B,), 1, T + 1, dtype=jnp.int32)
    sequence_lengths = sequence_lengths.at[0].set(0)   # exercise the 1e-5 clamp path

    # Deterministic "embed_net" (Linear) parameters.
    w = jax.random.normal(kw, (D_in, D_emb), dtype=jnp.float32) * (1.0 / (D_in ** 0.5))
    b = jax.random.normal(kb, (D_emb,), dtype=jnp.float32) * 0.01

    out = multitoken_avg_embed(x, sequence_lengths, w, b)
    out = jax.block_until_ready(out)

    ref = _reference(x, sequence_lengths, w, b)
    assert out.shape == (B, D_emb)
    assert jnp.allclose(out, ref, atol=1e-4, rtol=1e-4), (
        f"mismatch vs reference: max abs err {jnp.max(jnp.abs(out - ref))}")

    print("KERNEL_OK")
</pallas_src>

<mosaic_0001>
module attributes {stable_mosaic.version = 11 : i64} {
  func.func @_multitoken_avg_kernel(%arg0: i32, %arg1: memref<8x8x32xf32, #tpu.memory_space<vmem>>, %arg2: memref<8x1xi32, #tpu.memory_space<vmem>>, %arg3: memref<32x64xf32, #tpu.memory_space<vmem>>, %arg4: memref<1x64xf32, #tpu.memory_space<vmem>>, %arg5: memref<8x64xf32, #tpu.memory_space<vmem>>) attributes {dimension_semantics = [#tpu.dimension_semantics<parallel>], iteration_bounds = array<i64: 2>, scalar_prefetch = 0 : i64, scratch_operands = 0 : i64, tpu.core_type = #tpu.core_type<tc>, window_params = [{transform_indices = @transform_0, window_bounds = array<i64: 8, 8, 32>}, {transform_indices = @transform_1, window_bounds = array<i64: 8, 1>}, {pipeline_mode = #tpu.pipeline_mode<synchronous>, transform_indices = @transform_2, window_bounds = array<i64: 32, 64>}, {pipeline_mode = #tpu.pipeline_mode<synchronous>, transform_indices = @transform_3, window_bounds = array<i64: 1, 64>}, {transform_indices = @transform_4, window_bounds = array<i64: 8, 64>}]} {
    %0 = tpu.iota {dimensions = array<i32: 1>} : vector<8x8xi32>
    %c0 = arith.constant 0 : index
    %c0_0 = arith.constant 0 : index
    %1 = vector.load %arg2[%c0, %c0_0] : memref<8x1xi32, #tpu.memory_space<vmem>>, vector<8x1xi32>
    %2 = vector.broadcast %1 : vector<8x1xi32> to vector<8x8xi32>
    %3 = arith.cmpi slt, %0, %2 : vector<8x8xi32>
    %4 = arith.extui %3 : vector<8x8xi1> to vector<8x8xi32>
    %5 = arith.sitofp %4 : vector<8x8xi32> to vector<8x8xf32>
    %cst = arith.constant 1.250000e-01 : f32
    %6 = vector.broadcast %cst : f32 to vector<8x8xf32>
    %7 = arith.mulf %5, %6 : vector<8x8xf32>
    %cst_1 = arith.constant dense<0.000000e+00> : vector<8xf32>
    %8 = vector.multi_reduction <add>, %7, %cst_1 [1] : vector<8x8xf32> to vector<8xf32>
    %9 = vector.shape_cast %8 : vector<8xf32> to vector<8x1xf32>
    %cst_2 = arith.constant 9.99999974E-6 : f32
    %10 = vector.broadcast %cst_2 : f32 to vector<8x1xf32>
    %11 = arith.maximumf %9, %10 : vector<8x1xf32>
    %12 = tpu.reciprocal %11 {approx = true} : vector<8x1xf32> -> vector<8x1xf32>
    %13 = arith.mulf %11, %12 : vector<8x1xf32>
    %cst_3 = arith.constant 2.000000e+00 : f32
    %14 = vector.broadcast %cst_3 : f32 to vector<8x1xf32>
    %15 = arith.subf %14, %13 : vector<8x1xf32>
    %16 = arith.mulf %12, %15 : vector<8x1xf32>
    %17 = vector.broadcast %16 : vector<8x1xf32> to vector<8x8xf32>
    %18 = arith.mulf %7, %17 : vector<8x8xf32>
    %cst_4 = arith.constant dense<0.000000e+00> : vector<8xf32>
    %19 = vector.multi_reduction <add>, %18, %cst_4 [1] : vector<8x8xf32> to vector<8xf32>
    %20 = vector.shape_cast %19 : vector<8xf32> to vector<8x1xf32>
    %c0_5 = arith.constant 0 : index
    %c0_6 = arith.constant 0 : index
    %c0_7 = arith.constant 0 : index
    %21 = vector.load %arg1[%c0_5, %c0_6, %c0_7] : memref<8x8x32xf32, #tpu.memory_space<vmem>>, vector<8x8x32xf32>
    %22 = vector.shape_cast %18 : vector<8x8xf32> to vector<8x8x1xf32>
    %23 = vector.broadcast %22 : vector<8x8x1xf32> to vector<8x8x32xf32>
    %24 = arith.mulf %21, %23 : vector<8x8x32xf32>
    %cst_8 = arith.constant dense<0.000000e+00> : vector<8x32xf32>
    %25 = vector.multi_reduction <add>, %24, %cst_8 [1] : vector<8x8x32xf32> to vector<8x32xf32>
    %c0_9 = arith.constant 0 : index
    %c0_10 = arith.constant 0 : index
    %26 = vector.load %arg3[%c0_9, %c0_10] : memref<32x64xf32, #tpu.memory_space<vmem>>, vector<32x64xf32>
    %cst_11 = arith.constant dense<0.000000e+00> : vector<8x64xf32>
    %27 = tpu.matmul %25, %26, %cst_11 {dimension_numbers = #tpu.dot_dimension_numbers<[1], [0], [0], [1], [0, 0, 1, 1], [], []>} : vector<8x32xf32>, vector<32x64xf32>, vector<8x64xf32> -> vector<8x64xf32>
    %c0_12 = arith.constant 0 : index
    %c0_13 = arith.constant 0 : index
    %28 = vector.load %arg4[%c0_12, %c0_13] : memref<1x64xf32, #tpu.memory_space<vmem>>, vector<1x64xf32>
    %29 = vector.broadcast %20 : vector<8x1xf32> to vector<8x64xf32>
    %30 = vector.broadcast %28 : vector<1x64xf32> to vector<8x64xf32>
    %31 = arith.mulf %29, %30 : vector<8x64xf32>
    %32 = arith.addf %27, %31 : vector<8x64xf32>
    %c0_14 = arith.constant 0 : index
    %c0_15 = arith.constant 0 : index
    %33 = vector.load %arg5[%c0_14, %c0_15] : memref<8x64xf32, #tpu.memory_space<vmem>>, vector<8x64xf32>
    tpu.vector_store %arg5[%c0_14, %c0_15], %32 {strides = array<i32>} : memref<8x64xf32, #tpu.memory_space<vmem>>, vector<8x64xf32>,
    return
  }
  func.func @transform_0(%arg0: i32) -> (i32, i32, i32) {
    %c0_i32 = arith.constant 0 : i32
    %c0_i32_0 = arith.constant 0 : i32
    %c0_i32_1 = arith.constant 0 : i32
    return %arg0, %c0_i32, %c0_i32_0 : i32, i32, i32
  }
  func.func @transform_1(%arg0: i32) -> (i32, i32) {
    %c0_i32 = arith.constant 0 : i32
    %c0_i32_0 = arith.constant 0 : i32
    return %arg0, %c0_i32 : i32, i32
  }
  func.func @transform_2(%arg0: i32) -> (i32, i32) {
    %c0_i32 = arith.constant 0 : i32
    %c0_i32_0 = arith.constant 0 : i32
    %c0_i32_1 = arith.constant 0 : i32
    return %c0_i32, %c0_i32_0 : i32, i32
  }
  func.func @transform_3(%arg0: i32) -> (i32, i32) {
    %c0_i32 = arith.constant 0 : i32
    %c0_i32_0 = arith.constant 0 : i32
    %c0_i32_1 = arith.constant 0 : i32
    return %c0_i32, %c0_i32_0 : i32, i32
  }
  func.func @transform_4(%arg0: i32) -> (i32, i32) {
    %c0_i32 = arith.constant 0 : i32
    %c0_i32_0 = arith.constant 0 : i32
    return %arg0, %c0_i32 : i32, i32
  }
}

</mosaic_0001>

<bundles_post_ra>
// kernel: tpu_custom_call.1
= control target key start
LH: loop header
LB: loop body
LE: loop exit
PB: predicated region body
PF: predicated region fallthrough
CT: control target
= control target key end

     0   :  { %9 = vsyncpa [#allocation3], 0  ;;  %s1078_s0 = inlined_call_operand.hbm [shape: f32[16,8,32], index: 0, kind: input, shape index: {}]   ;;  %s1079_s1 = inlined_call_operand.vmem [shape: s32[16,1], index: 1, kind: input, shape index: {}]   ;;  %s1080_s2 = inlined_call_operand.hbm [shape: f32[32,64], index: 2, kind: input, shape index: {}]   ;;  %s1081_s3 = inlined_call_operand.vmem [shape: f32[1,64], index: 3, kind: input, shape index: {}]   ;;  %s1082_s4 = inlined_call_operand.hbm [shape: f32[16,64], index: 4, kind: output, shape index: {}]  }
   0x1   :  { %11 = vsyncpa [#allocation3 + $0x1], 0 }
   0x2   :  { %12 = vsyncpa [#allocation6], 0 }
   0x3   :  { %13 = vsyncpa [#allocation4], 0 }
   0x4   :  { %15 = vsyncpa [#allocation4 + $0x1], 0  ;;  %s873_s15 = smov 0   ;;  %s875_s16 = smov 0  }
   0x5   :  { %s877_s17 = smov 0   ;;  %s879_s18 = smov 0  }
   0x6 LB: > { %s894_s19 = sadd.s32 4294967295, %s838_s18   ;;  %s615_s20 = sadd.s32 4294967294, %s838_s18   ;;  %s838_s18 = sphi %s879_s18, %s1104_s18   ;;  %s834_s17 = sphi %s877_s17, %s1103_s17   ;;  %s830_s16 = sphi %s875_s16, %s1102_s16   ;;  %s826_s15 = sphi %s873_s15, %s1101_s15  }
   0x7   : > { %p41_p0 = scmp.ne.s32.totalorder %s830_s16, %s826_s15  ;;  %p1083_p1 = scmp.eq.s32.totalorder %s894_s19, 0 }
   0x8   : > { %p139_p3 = scmp.eq.s32.totalorder %s615_s20, 1  ;;  %p616_p5 = scmp.ge.s32.totalorder %s838_s18, 1 }
   0x9   : > { %p903_p4 = por %p1083_p1, %p41_p0  ;;  %p146_p7 = scmp.lt.s32.totalorder %s838_s18, 3 }
   0xa   : > { %p908_p6 = por %p139_p3, %p41_p0  ;;  %s840_s24 = smov [#allocation5]  }
   0xb   : > { %s1087_s21 = scalar_select %p903_p4, 1, 0 }
   0xc   : > { %s1088_s22 = scalar_select %p908_p6, 1, 0 }
   0xd   : > { %p913_p8 = pnand %p616_p5, %p146_p7  ;;  %s158_s25 = sshll.u32 %s840_s24, 4  ;;  %s159_s25 = int_to_ptr.vmem [resolvable:$true] %s158_s25 }
   0xe   : > { %s927_s27 = sadd.s32 1, %s838_s18   ;;  %s28_s28 = sadd.s32 1, %s834_s17 }
   0xf   : > { %s1089_s23 = scalar_select %p913_p8, 1, 0 }
  0x10   : > { %p659_p9 = pneg %p913_p8  ;;  %s25_s29 = ssub.s32 %s838_s18, %s927_s27 }
  0x11   : > { %s727_s30 = scalar_lea.vmem %s159_s25, 512  ;;  %p735_p5 = scmp.lt.s32.totalorder %s159_s25, %s159_s25 }
  0x12   : > { %p922_p11 = pnand %p659_p9, %p1083_p1  ;;  %p728_p13 = scmp.ne.s32.totalorder %s159_s25, %s727_s30 }
  0x13   : > { %p736_p7 = scmp.lt.s32.totalorder %s727_s30, %s727_s30 }
  0x14   : > { %p718_p12 = pneg %p922_p11 }
  0x15   : > { %p737_p10 = por %p736_p7, %p735_p5 }
  0x16   : > { %p730_p0 = pnand %p728_p13, %p718_p12 }
  0x18   : > { %p731_p3 = pneg %p730_p0 }
  0x1a   : > { %p738_p2 = pnand %p737_p10, %p731_p3 }
  0x1c   : > { %741 = shalt.err (!%p738_p2)
}
  0x1d   : > { %s841_s5 = smov 128   ;;  %s842_s6 = smov 8  }
  0x1e   : > { %662 = dma.hbm_to_vmem [thread:$0]  (!%p922_p11), %s1080_s2, 512, %s159_s25, [#allocation6], %s841_s5, %s841_s5, %s842_s6  }
  0x1f   : > { %p26_p2 = scmp.eq.s32.totalorder %s25_s29, 0  ;;  %p35_p9 = scmp.ne.s32.totalorder %s834_s17, %s830_s16 }
  0x20   : > { %p36_p10 = scmp.eq.s32.totalorder %s838_s18, 0  ;;  %p672_p12 = scmp.lt.s32.totalorder %s838_s18, 2 }
  0x21   : > { %s947_s9 = scalar_select %p26_p2, %s834_s17, %s28_s28  }
  0x22   : > { %p37_p13 = por %p36_p10, %p35_p9  ;;  %p1091_p0 = scmp.eq.s32.totalorder %s894_s19, 1 }
  0x23   : > { %s175_s11 = sand.u32 1, %s834_s17   ;;  %s634_s12 = sshll.u32 %s838_s18, 10 }
  0x24   : > { %p951_p3 = por %p1091_p0, %p35_p9  ;;  %s619_s13 = sshll.u32 %s175_s11, 6 }
  0x25   : > { %s960_s24 = scalar_lea.hbm %s1078_s0, %s634_s12  ;;  %s179_s25 = scalar_lea.vmem [#allocation2], %s619_s13 }
  0x26   : > { %s1092_s10 = scalar_select %p951_p3, 1, 0 }
  0x27   : > { %s186_s26 = sshll.u32 %s179_s25, 4  ;;  %p962_p11 = pnand %p672_p12, %p37_p13  ;;  %s966_s26 = int_to_ptr.vmem [resolvable:$true] %s186_s26 }
  0x28   : > { %s968_s29 = scalar_lea.sflag [#allocation3], %s175_s11  ;;  %s742_s30 = scalar_lea.hbm %s960_s24, 1024 }
  0x29   : > { %p743_p5 = scmp.ne.s32.totalorder %s960_s24, %s742_s30  ;;  %p744_p7 = pneg %p962_p11 }
  0x2a   : > { %s747_s12 = scalar_lea.hbm %s1078_s0, 2048  ;;  %p748_p10 = scmp.lt.s32.totalorder %s960_s24, %s1078_s0 }
  0x2b   : > { %p745_p2 = pnand %p744_p7, %p743_p5  ;;  %p749_p12 = scmp.lt.s32.totalorder %s747_s12, %s742_s30 }
  0x2d   : > { %p746_p9 = pneg %p745_p2  ;;  %p750_p13 = por %p749_p12, %p748_p10 }
  0x2f   : > { %p751_p0 = pnand %p750_p13, %p746_p9 }
  0x31   : > { %754 = shalt.err (!%p751_p0)
}
  0x32   : > { %s755_s11 = scalar_lea.vmem %s966_s26, 1024  ;;  %s843_s20 = smov [#allocation2]  }
  0x33   : > { %p756_p1 = scmp.ne.s32.totalorder %s966_s26, %s755_s11  ;;  %s760_s25 = sshll.u32 %s843_s20, 4  ;;  %s761_s25 = int_to_ptr.vmem [resolvable:$false] %s760_s25 }
  0x34   : > { %s762_s7 = scalar_lea.vmem %s761_s25, 2048  ;;  %p763_p2 = scmp.lt.s32.totalorder %s966_s26, %s761_s25 }
  0x35   : > { %p758_p6 = pnand %p756_p1, %p744_p7  ;;  %p764_p3 = scmp.lt.s32.totalorder %s762_s7, %s755_s11 }
  0x37   : > { %p759_p5 = pneg %p758_p6  ;;  %p765_p4 = por %p764_p3, %p763_p2 }
  0x39   : > { %p766_p8 = pnand %p765_p4, %p759_p5 }
  0x3b   : > { %769 = shalt.err (!%p766_p8)
}
  0x3c   : > { %666 = dma.hbm_to_vmem [thread:$0]  (!%p962_p11), %s960_s24, 1024, %s966_s26, %s968_s29, %s841_s5, %s841_s5, %s842_s6  }
  0x3d   : > { %p1094_p1 = scmp.ne.s32.totalorder %s1089_s23, 0 }
  0x3e   : > { %s995_s30 = sand.u32 (!%p1094_p1), 1, %s830_s16   ;;  %p1095_p4 = scmp.ne.s32.totalorder (!%p1094_p1), %s1087_s21, 0 }
  0x3f   : > { %205 = sbr.rel (%p1094_p1) target bundleno = 739 (0x2e3), region = 36  ;;  %s623_s8 = sshll.u32 (!%p1094_p1), %s995_s30, 6 }
  0x40   : > { %s208_s12 = scalar_lea.sflag (!%p1094_p1), [#allocation3], %s995_s30  ;;  %s999_s13 = scalar_lea.vmem (!%p1094_p1), [#allocation2], %s623_s8 }
  0x44   : > { %813 = dma.done.wait (%p1095_p4), %s208_s12, 1024  }
  0x45   : > { %815 = vsyncadd (%p1095_p4), %s208_s12, 4294966272  ;;  %p1096_p6 = scmp.eq.s32.totalorder %s894_s19, 0 }
  0x47   : > { %817 = dma.done.wait (%p1096_p6), [#allocation6], 512   ;;  %p1097_p8 = pmov %p1096_p6 }
  0x48   : > { %p245_p3 = scmp.lt.s32.totalorder %s894_s19, 1  ;;  %v844_v0 = vmov 0   ;;  %v845_v1 = vmov 0.0   ;;  %v249_v3 = vlaneseq  ;;  %vm259_vm1 = vcmask 64512   ;;  %v404_v32 = vld [vmem:[#allocation5 + $0x18] sm:$0xff]  ;;  %v403_v34 = vld [vmem:[#allocation5 + $0x10] sm:$0xff] }
  0x49   : > { %819 = vsyncadd (%p1097_p8), [#allocation6], 4294966784  ;;  %713 = vset.pattern.permute.xlu0 %v844_v0  ;;  %640 = vmatprep.subr.mxu0 %v845_v1  ;;  %v402_v35 = vld [vmem:[#allocation5 + $0x8] sm:$0xff]  ;;  %v401_v36 = vld [vmem:[#allocation5] sm:$0xff]  ;;  %vm846_vm2 = vmmov 0   ;;  %vm344_vm3 = vcmask 261120  }
  0x4a   : > { %s246_s23 = scalar_select %p245_p3, %s894_s19, 1  ;;  %v250_v4 = vand.u32 127, %v249_v3  ;;  %v281_v12 = vshrl.u32 %v249_v3, 7  ;;  %641 = vmatpush3.msra.mxu0 %v404_v32  ;;  %648 = vmatprep.mubr.msk.f32.mxu0 %vm846_vm2, %v845_v1  ;;  %v273_v39 = vld [vmem:[%s999_s13 + $0x8] sm:$0xff]  ;;  %v272_v41 = vld [vmem:[%s999_s13] sm:$0xff]  ;;  %v274_v42 = vld [vmem:[%s999_s13 + $0x10] sm:$0xff] }
  0x4b   : > { %642 = vmatprep.subr.mxu0 %v845_v1  ;;  %v275_v47 = vld [vmem:[%s999_s13 + $0x18] sm:$0xff]  ;;  %v276_v54 = vld [vmem:[%s999_s13 + $0x20] sm:$0xff]  ;;  %v277_v62 = vld [vmem:[%s999_s13 + $0x28] sm:$0xff]  ;;  %vm421_vm4 = vcmask 1041409   ;;  %vm423_vm5 = vcmask 1042434   ;;  %vm425_vm6 = vcmask 1043459  }
  0x4c   : > { %s626_s5 = sshll.u32 %s246_s23, 3  ;;  %v282_v16 = vsub.s32 0, %v281_v12  ;;  %v289_v19 = vsub.s32 1, %v281_v12  ;;  %v296_v21 = vsub.s32 2, %v281_v12  ;;  %v303_v23 = vsub.s32 3, %v281_v12  ;;  %643 = vmatpush3.msra.mxu0 %v403_v34  ;;  %s625_s26 = sshll.u32 %s995_s30, 3 }
  0x4d   : > { %s248_s21 = scalar_lea.vmem %s1079_s1, %s626_s5  ;;  %v310_v25 = vsub.s32 4, %v281_v12  ;;  %v317_v27 = vsub.s32 5, %v281_v12  ;;  %v324_v29 = vsub.s32 6, %v281_v12  ;;  %v331_v31 = vsub.s32 7, %v281_v12  ;;  %644 = vmatprep.subr.mxu0 %v845_v1  ;;  %s631_s14 = sshll.u32 %s894_s19, 7 }
  0x4e   : > { %v251_v2 = vld [vmem:[%s248_s21] sm:$0xff]  ;;  %645 = vmatpush3.msra.mxu0 %v402_v35  ;;  %vm427_vm7 = vcmask 1044484   ;;  %vm429_vm8 = vcmask 1045509   ;;  %vm431_vm9 = vcmask 1046534   ;;  %vm433_vm10 = vcmask 1047559   ;;  %s243_s11 = scalar_lea.vmem [#allocation7], %s625_s26  ;;  %s1041_s8 = scalar_lea.hbm %s1082_s4, %s631_s14 }
  0x4f   : > { %253 = vperm.xlu0 %713, %v251_v2   ;;  %646 = vmatprep.subr.mxu0 %v845_v1  ;;  %s523_s20 = sshll.u32 %s243_s11, 4  ;;  %vm507_vm11 = vcmask 523264   ;;  %s510_s12 = scalar_lea.sflag [#allocation4], %s995_s30  ;;  %s524_s20 = int_to_ptr.vmem [resolvable:$true] %s523_s20 }
  0x50   : > { %647 = vmatpush3.msra.mxu0 %v401_v36  ;;  %p1098_p7 = scmp.ne.s32.totalorder %s1092_s10, 0  ;;  %s847_s19 = smov [#allocation7]  }
  0x51   : > { %s774_s23 = sshll.u32 %s847_s19, 4  ;;  %s775_s23 = int_to_ptr.vmem [resolvable:$false] %s774_s23 }
  0x52   : > { %s776_s5 = scalar_lea.vmem %s775_s23, 256  ;;  %p777_p12 = scmp.lt.s32.totalorder %s524_s20, %s775_s23 }
  0xca   : > { %v254_v5 = vpop.permute.xlu0 %253 }
  0xcb   : > { %vm255_vm0 = vcmp.lt.s32.totalorder %v250_v4, %v254_v5 }
  0xcc   : > { %v627_v6 = vsel %vm255_vm0, 1.0, %v845_v1 }
  0xcd   : > { %v258_v7 = vmul.f32 0.125, %v627_v6 }
  0xcf   : > { %v260_v8 = vsel %vm259_vm1, %v258_v7, 0.0 }
  0xd0   : > { %261 = vadd.xlane.f32.xlu0 %v260_v8  ;;  %v278_v8 = vld [vmem:[%s999_s13 + $0x30] sm:$0xff] }
 0x159   : > { %v262_v9 = vpop.xlane.xlu0 %261 }
 0x15a   : > { %v263_v10 = vmax.f32 %v262_v9, 1e-05 }
 0x15c   : > { %714 = vrcp.f32 %v263_v10 }
 0x169   : > { %v715_v11 = vpop.eup %714 }
 0x16a   : > { %v265_v13 = vmul.f32 %v715_v11, %v263_v10 }
 0x16c   : > { %v266_v14 = vsub.f32 2.0, %v265_v13 }
 0x16e   : > { %v267_v15 = vmul.f32 %v715_v11, %v266_v14 }
 0x170   : > { %v268_v17 = vmul.f32 %v267_v15, %v258_v7 }
 0x172   : > { %v283_v18 = vrot.slane %v268_v17, %v282_v16  ;;  %v290_v20 = vrot.slane %v268_v17, %v289_v19  ;;  %v297_v22 = vrot.slane %v268_v17, %v296_v21  ;;  %v304_v24 = vrot.slane %v268_v17, %v303_v23  ;;  %v279_v19 = vld [vmem:[%s999_s13 + $0x38] sm:$0xff]  ;;  %s770_s13 = scalar_lea.vmem %s524_s20, 128 }
 0x173   : > { %v311_v26 = vrot.slane %v268_v17, %v310_v25  ;;  %v318_v28 = vrot.slane %v268_v17, %v317_v27  ;;  %v325_v30 = vrot.slane %v268_v17, %v324_v29  ;;  %v332_v33 = vrot.slane %v268_v17, %v331_v31  ;;  %p771_p11 = scmp.ne.s32.totalorder %s524_s20, %s770_s13  ;;  %p778_p13 = scmp.lt.s32.totalorder %s776_s5, %s770_s13 }
 0x174   : > { %285 = vbcast.lane.b32.xlu1 %v283_v18, 256  ;;  %v269_v37 = vsel %vm259_vm1, %v268_v17, 0.0 }
 0x175   : > { %p772_p9 = pnand %p771_p11, %p1098_p7  ;;  %p779_p0 = por %p778_p13, %p777_p12 }
 0x177   : > { %p773_p10 = pneg %p772_p9 }
 0x178   : > { %292 = vbcast.lane.b32.xlu1 %v290_v20, 256 }
 0x179   : > { %p780_p5 = pnand %p779_p0, %p773_p10 }
 0x17c   : > { %299 = vbcast.lane.b32.xlu1 %v297_v22, 256 }
 0x180   : > { %306 = vbcast.lane.b32.xlu1 %v304_v24, 256 }
 0x184   : > { %313 = vbcast.lane.b32.xlu1 %v311_v26, 256 }
 0x188   : > { %320 = vbcast.lane.b32.xlu1 %v318_v28, 256 }
 0x18c   : > { %327 = vbcast.lane.b32.xlu1 %v325_v30, 256 }
 0x190   : > { %334 = vbcast.lane.b32.xlu1 %v332_v33, 256 }
 0x1b4   : > { %270 = vadd.xlane.f32.xlu1 %v269_v37 }
 0x1e6   : > { %v286_v38 = vpop.permute.xlu1 %285 }
 0x1e7   : > { %v336_v45 = vmul.f32 %v286_v38, %v272_v41 }
 0x1e9   : > { %v345_v51 = vsel %vm344_vm3, %v336_v45, 0.0 }
 0x1ea   : > { %v293_v40 = vpop.permute.xlu1 %292  ;;  %v346_v57 = vrot.slane %v345_v51, 4 }
 0x1eb   : > { %v337_v43 = vmul.f32 %v293_v40, %v273_v39 }
 0x1ec   : > { %v347_v1 = vadd.f32 %v346_v57, %v345_v51 }
 0x1ed   : > { %v352_v48 = vsel %vm344_vm3, %v337_v43, 0.0 }
 0x1ee   : > { %v300_v44 = vpop.permute.xlu1 %299  ;;  %v353_v53 = vrot.slane %v352_v48, 4  ;;  %v348_v11 = vrot.slane %v347_v1, 2 }
 0x1ef   : > { %v338_v46 = vmul.f32 %v300_v44, %v274_v42 }
 0x1f0   : > { %v354_v61 = vadd.f32 %v353_v53, %v352_v48  ;;  %v349_v22 = vadd.f32 %v348_v11, %v347_v1 }
 0x1f1   : > { %v359_v49 = vsel %vm344_vm3, %v338_v46, 0.0 }
 0x1f2   : > { %v307_v50 = vpop.permute.xlu1 %306  ;;  %v360_v55 = vrot.slane %v359_v49, 4  ;;  %v355_v6 = vrot.slane %v354_v61, 2  ;;  %v350_v34 = vrot.slane %v349_v22, 1 }
 0x1f3   : > { %v339_v52 = vmul.f32 %v307_v50, %v275_v47 }
 0x1f4   : > { %v361_v63 = vadd.f32 %v360_v55, %v359_v49  ;;  %v356_v17 = vadd.f32 %v355_v6, %v354_v61  ;;  %v351_v44 = vadd.f32 %v350_v34, %v349_v22  ;;  %v628_v61 = vld [vmem:[%s1081_s3] ss:$0 sm:$0xff] }
 0x1f5   : > { %v366_v56 = vsel %vm344_vm3, %v339_v52, 0.0 }
 0x1f6   : > { %v367_v58 = vrot.slane %v366_v56, 4  ;;  %v314_v59 = vpop.permute.xlu1 %313  ;;  %v362_v9 = vrot.slane %v361_v63, 2  ;;  %v357_v29 = vrot.slane %v356_v17, 1 }
 0x1f7   : > { %v340_v60 = vmul.f32 %v314_v59, %v276_v54 }
 0x1f8   : > { %v368_v2 = vadd.f32 %v367_v58, %v366_v56  ;;  %v363_v20 = vadd.f32 %v362_v9, %v361_v63  ;;  %v358_v39 = vadd.f32 %v357_v29, %v356_v17 }
 0x1f9   : > { %v373_v0 = vsel %vm344_vm3, %v340_v60, 0.0 }
 0x1fa   : > { %v374_v3 = vrot.slane %v373_v0, 4  ;;  %v321_v4 = vpop.permute.xlu1 %320  ;;  %v369_v12 = vrot.slane %v368_v2, 2  ;;  %v364_v32 = vrot.slane %v363_v20, 1  ;;  %v422_v49 = vsel %vm421_vm4, %v358_v39, %v351_v44 }
 0x1fb   : > { %v341_v5 = vmul.f32 %v321_v4, %v277_v62 }
 0x1fc   : > { %v375_v7 = vadd.f32 %v374_v3, %v373_v0  ;;  %v370_v23 = vadd.f32 %v369_v12, %v368_v2  ;;  %v365_v43 = vadd.f32 %v364_v32, %v363_v20 }
 0x1fd   : > { %v380_v10 = vsel %vm344_vm3, %v341_v5, 0.0 }
 0x1fe   : > { %v381_v13 = vrot.slane %v380_v10, 4  ;;  %v328_v14 = vpop.permute.xlu1 %327  ;;  %v376_v15 = vrot.slane %v375_v7, 2  ;;  %v371_v35 = vrot.slane %v370_v23, 1  ;;  %v424_v52 = vsel %vm423_vm5, %v365_v43, %v422_v49 }
 0x1ff   : > { %v342_v16 = vmul.f32 %v328_v14, %v278_v8 }
 0x200   : > { %v382_v18 = vadd.f32 %v381_v13, %v380_v10  ;;  %v377_v27 = vadd.f32 %v376_v15, %v375_v7  ;;  %v372_v45 = vadd.f32 %v371_v35, %v370_v23 }
 0x201   : > { %v387_v21 = vsel %vm344_vm3, %v342_v16, 0.0 }
 0x202   : > { %v383_v24 = vrot.slane %v382_v18, 2  ;;  %v388_v25 = vrot.slane %v387_v21, 4  ;;  %v335_v26 = vpop.permute.xlu1 %334  ;;  %v378_v38 = vrot.slane %v377_v27, 1  ;;  %v426_v54 = vsel %vm425_vm6, %v372_v45, %v424_v52 }
 0x203   : > { %v343_v28 = vmul.f32 %v335_v26, %v279_v19 }
 0x204   : > { %v384_v30 = vadd.f32 %v383_v24, %v382_v18  ;;  %v389_v31 = vadd.f32 %v388_v25, %v387_v21  ;;  %v379_v48 = vadd.f32 %v378_v38, %v377_v27 }
 0x205   : > { %v394_v33 = vsel %vm344_vm3, %v343_v28, 0.0 }
 0x206   : > { %v390_v36 = vrot.slane %v389_v31, 2  ;;  %v395_v37 = vrot.slane %v394_v33, 4  ;;  %v385_v40 = vrot.slane %v384_v30, 1  ;;  %v428_v56 = vsel %vm427_vm7, %v379_v48, %v426_v54 }
 0x208   : > { %v391_v41 = vadd.f32 %v390_v36, %v389_v31  ;;  %v396_v42 = vadd.f32 %v395_v37, %v394_v33  ;;  %v386_v50 = vadd.f32 %v385_v40, %v384_v30 }
 0x20a   : > { %v392_v46 = vrot.slane %v391_v41, 1  ;;  %v397_v47 = vrot.slane %v396_v42, 2  ;;  %v430_v58 = vsel %vm429_vm8, %v386_v50, %v428_v56 }
 0x20c   : > { %v398_v51 = vadd.f32 %v397_v47, %v396_v42  ;;  %v393_v53 = vadd.f32 %v392_v46, %v391_v41 }
 0x20e   : > { %v399_v55 = vrot.slane %v398_v51, 1  ;;  %v432_v59 = vsel %vm431_vm9, %v393_v53, %v430_v58 }
 0x210   : > { %v400_v57 = vadd.f32 %v399_v55, %v398_v51 }
 0x212   : > { %v434_v60 = vsel %vm433_vm10, %v400_v57, %v432_v59 }
 0x213   : > { %649 = vmatmul.mubr.msk.f32.vlgmr.msra.gmra.mxu0 %vm344_vm3, %v434_v60 }
 0x23d   : > { %v271_v62 = vpop.xlane.xlu1 %270 }
 0x23e   : > { %v412_v63 = vmul.f32 %v628_v61, %v271_v62 }
 0x2d3   : > { %v503_v0 = vpop.f32.mrf.mxu0 }
 0x2d4   : > { %v504_v1 = vadd.f32 %v503_v0, %v412_v63 }
 0x2d5   : > { %v650_v2 = vpop.f32.mrf.mxu0 }
 0x2d6   : > { %508 = vst.msk [vmem:[%s243_s11] sm:$0xff] %vm507_vm11, %v504_v1 }
 0x2d7   : > { %783 = shalt.err (!%p780_p5)
}
 0x2d8   : > { %s784_s6 = scalar_lea.hbm %s1041_s8, 128  ;;  %s788_s21 = scalar_lea.hbm %s1082_s4, 256 }
 0x2d9   : > { %p785_p2 = scmp.ne.s32.totalorder %s1041_s8, %s784_s6  ;;  %p789_p6 = scmp.lt.s32.totalorder %s1041_s8, %s1082_s4 }
 0x2da   : > { %p790_p8 = scmp.lt.s32.totalorder %s788_s21, %s784_s6 }
 0x2db   : > { %p786_p1 = pnand %p785_p2, %p1098_p7 }
 0x2dc   : > { %p791_p3 = por %p790_p8, %p789_p6 }
 0x2dd   : > { %p787_p4 = pneg %p786_p1 }
 0x2df   : > { %p792_p11 = pnand %p791_p3, %p787_p4 }
 0x2e1   : > { %795 = shalt.err (!%p792_p11)
}
 0x2e2   : > { %657 = dma.vmem_to_hbm [thread:$0]  (%p1098_p7), %s524_s20, 128, %s1041_s8, %s510_s12  }
 0x2e3 PF: > { %s535_s29 = sand.u32 1, %s826_s15   ;;  %p1099_p9 = scmp.ne.s32.totalorder %s1088_s22, 0 }
 0x2e4   : > { %p1100_p10 = scmp.ge.s32.totalorder %s838_s18, 2  ;;  %s536_s14 = scalar_lea.sflag [#allocation4], %s535_s29 }
 0x2e6   : > { %p668_p12 = pnand %p1100_p10, %p1099_p9 }
 0x2e8   : > { %p669_p13 = pneg %p668_p12 }
 0x2ea   : > { %821 = dma.done.wait (%p669_p13), %s536_s14, 128  }
 0x2eb   : > { %823 = vsyncadd (%p669_p13), %s536_s14, 4294967168  ;;  %p18_p0 = scmp.ge.s32.totalorder %s927_s27, 4   ;;  %s1101_s15 = smov %s830_s16 }
 0x2ec   : > { %s1102_s16 = smov %s834_s17  ;;  %s1103_s17 = smov %s947_s9 }
 0x2ed   : > { %s1104_s18 = smov %s927_s27  ;;  %20 = sbr.rel (!%p18_p0) target bundleno = 6 (0x6), region = 88 }
 0x2f2   :  { %541 = vsyncpa [#allocation3], 1 }
 0x2f3   :  { %543 = vsyncpa [#allocation3 + $0x1], 1 }
 0x2f4   :  { %544 = vsyncpa [#allocation6], 1 }
 0x2f5   :  { %545 = vsyncpa [#allocation4], 1 }
 0x2f6   :  { %547 = vsyncpa [#allocation4 + $0x1], 1 }

</bundles_post_ra>
